<compile_context>
chip_gen: v7x
topology: tpu7x:2x2x1
jax: 0.10.0
libtpu: 0.0.40
codegen_flags: <defaults>
</compile_context>

<pallas_src>
import functools

import jax
import jax.numpy as jnp
from jax import lax
from jax.experimental import pallas as pl
from jax.experimental.pallas import tpu as pltpu


def _round_up(x, m):
    return (x + m - 1) // m * m


def _pad_feature(d):
    # 256-multiples once the dim can fill a 256-wide MXU (v6e/v7x), else 128.
    return _round_up(d, 256) if d >= 256 else _round_up(d, 128)


def _choose_tb(B, block_b):
    """Batch tile: multiple of 16, capped at block_b, balanced for megacore."""
    cap = max(16, (min(block_b, 1024) // 16) * 16)
    b16 = _round_up(B, 16)
    if b16 <= cap:
        # Moderate batch: split into two balanced tiles so both v7x TensorCores
        # get one tile each (near-free on v5e/v6e: one extra ~0.35us grid step).
        if b16 >= 256:
            return _round_up(b16 // 2, 16)
        return b16
    return cap


def ood_mlp_kernel(x_ref, w1_ref, b1_ref, w2_ref, b2_ref, logp_ref, emb_ref,
                   *, n_class, c_pad):
    # fc1: bf16 operands (x cast in-kernel), f32 MXU accumulation; bias+ReLU f32.
    h = jnp.dot(x_ref[...].astype(w1_ref.dtype), w1_ref[...],
                preferred_element_type=jnp.float32)
    h = jnp.maximum(h + b1_ref[...], 0.0)

    # fc2 -> logits ("embedding").
    logits = jnp.dot(h.astype(w2_ref.dtype), w2_ref[...],
                     preferred_element_type=jnp.float32)
    logits = logits + b2_ref[...]                      # (TB, Cpad), f32

    emb_ref[...] = logits.astype(emb_ref.dtype)        # direct lane-dense store

    # LogSoftmax over the class axis. Mask padded class columns only when
    # padding actually exists (trace-time check); finite sentinel is NaN-safe.
    if n_class == c_pad:
        masked = logits
    else:
        col = lax.broadcasted_iota(jnp.int32, logits.shape, 1)
        masked = jnp.where(col < n_class, logits, jnp.finfo(jnp.float32).min)
    m = jnp.max(masked, axis=1, keepdims=True)
    shifted = masked - m
    lse = jnp.log(jnp.sum(jnp.exp(shifted), axis=1, keepdims=True))
    logp_ref[...] = (shifted - lse).astype(logp_ref.dtype)


@functools.partial(jax.jit, static_argnames=("block_b",))
def ood_mlp_forward(x, w1, b1, w2, b2, *, block_b=512):
    """x: (B, x_dim). w1: (x_dim, H), b1: (1, H), w2: (H, C), b2: (1, C).

    Weights stored as (in_features, out_features), i.e. transposed w.r.t.
    PyTorch nn.Linear. Returns (log_softmax, logits), both (B, C) float32.
    """
    B, x_dim = x.shape
    H = w1.shape[1]
    C = w2.shape[1]

    x_pad_dim = _round_up(x_dim, 128)
    h_pad = _pad_feature(H)
    c_pad = _pad_feature(C)

    tb = _choose_tb(B, block_b)
    b_pad = _round_up(B, tb)

    # x: avoid a materialized HBM pre-pass when possible. Kernel casts to bf16.
    if x_dim != x_pad_dim:
        xp = jnp.zeros((b_pad, x_pad_dim), jnp.bfloat16)
        xp = xp.at[:B, :x_dim].set(x.astype(jnp.bfloat16))
    elif b_pad != B:
        xp = jnp.pad(x, ((0, b_pad - B), (0, 0)))      # rows only, keep f32
    else:
        xp = x                                          # no pre-pass at all

    # Weights / biases are small and reused: pad in the wrapper. bf16 for MXU.
    w1p = jnp.zeros((x_pad_dim, h_pad), jnp.bfloat16).at[:x_dim, :H].set(
        w1.astype(jnp.bfloat16))
    b1p = jnp.zeros((1, h_pad), jnp.float32).at[:, :H].set(b1.astype(jnp.float32))
    w2p = jnp.zeros((h_pad, c_pad), jnp.bfloat16).at[:H, :C].set(
        w2.astype(jnp.bfloat16))
    b2p = jnp.zeros((1, c_pad), jnp.float32).at[:, :C].set(b2.astype(jnp.float32))

    # Explicit VMEM provisioning (weights single-buffered, x/outputs double-).
    x_itemsize = jnp.dtype(xp.dtype).itemsize
    vmem_needed = (
        tb * x_pad_dim * x_itemsize * 2                 # x tile, double-buffered
        + x_pad_dim * h_pad * 2 + h_pad * c_pad * 2     # bf16 weights, 1-buffered
        + 8 * h_pad * 4 + 8 * c_pad * 4                 # biases (8-sublane padded)
        + tb * c_pad * 4 * 2 * 2                        # two f32 outs, 2-buffered
    )
    vmem_limit = int(min(max(2 * vmem_needed, 32 * 2**20), 128 * 2**20))

    cost = pl.CostEstimate(
        flops=2 * b_pad * (x_pad_dim * h_pad + h_pad * c_pad),
        transcendentals=b_pad * c_pad + b_pad,          # exp per logit + log per row
        bytes_accessed=(b_pad * x_pad_dim * x_itemsize
                        + x_pad_dim * h_pad * 2 + h_pad * c_pad * 2
                        + h_pad * 4 + c_pad * 4
                        + 2 * b_pad * c_pad * 4),
    )

    logp_pad, emb_pad = pl.pallas_call(
        functools.partial(ood_mlp_kernel, n_class=C, c_pad=c_pad),
        out_shape=(
            jax.ShapeDtypeStruct((b_pad, c_pad), jnp.float32),   # log-softmax
            jax.ShapeDtypeStruct((b_pad, c_pad), jnp.float32),   # logits
        ),
        grid_spec=pltpu.PrefetchScalarGridSpec(
            num_scalar_prefetch=0,
            grid=(b_pad // tb,),
            in_specs=[
                pl.BlockSpec((tb, x_pad_dim), lambda i: (i, 0)),   # x batch tile
                pl.BlockSpec((x_pad_dim, h_pad), lambda i: (0, 0),
                             pipeline_mode=pl.Buffered(1)),        # w1 resident
                pl.BlockSpec((1, h_pad), lambda i: (0, 0),
                             pipeline_mode=pl.Buffered(1)),        # b1 resident
                pl.BlockSpec((h_pad, c_pad), lambda i: (0, 0),
                             pipeline_mode=pl.Buffered(1)),        # w2 resident
                pl.BlockSpec((1, c_pad), lambda i: (0, 0),
                             pipeline_mode=pl.Buffered(1)),        # b2 resident
            ],
            out_specs=(
                pl.BlockSpec((tb, c_pad), lambda i: (i, 0)),
                pl.BlockSpec((tb, c_pad), lambda i: (i, 0)),
            ),
        ),
        compiler_params=pltpu.CompilerParams(
            dimension_semantics=("parallel",),
            vmem_limit_bytes=vmem_limit,
        ),
        cost_estimate=cost,
    )(xp, w1p, b1p, w2p, b2p)

    return logp_pad[:B, :C], emb_pad[:B, :C]


if __name__ == "__main__":
    # Small shapes consistent with the module: opt.x_dim, opt.embedSize, opt.n_class_seen
    batch = 8
    x_dim = 32
    embed_size = 64
    n_class_seen = 16

    key = jax.random.PRNGKey(0)
    kx, kw1, kb1, kw2, kb2 = jax.random.split(key, 5)

    x = jax.random.normal(kx, (batch, x_dim), dtype=jnp.float32)
    # Deterministic params; stored as (in, out) — transposed vs nn.Linear's (out, in).
    w1 = jax.random.normal(kw1, (x_dim, embed_size), dtype=jnp.float32) * 0.1
    b1 = jax.random.normal(kb1, (1, embed_size), dtype=jnp.float32) * 0.1
    w2 = jax.random.normal(kw2, (embed_size, n_class_seen), dtype=jnp.float32) * 0.1
    b2 = jax.random.normal(kb2, (1, n_class_seen), dtype=jnp.float32) * 0.1

    o, emb = ood_mlp_forward(x, w1, b1, w2, b2)
    jax.block_until_ready((o, emb))

    # Pure-JAX f32 reference. Kernel runs the matmuls in bf16 (f32 accumulation),
    # so tolerances are loosened accordingly.
    h_ref = jnp.maximum(x @ w1 + b1, 0.0)
    emb_ref = h_ref @ w2 + b2
    o_ref = jax.nn.log_softmax(emb_ref, axis=1)

    assert o.shape == (batch, n_class_seen) and emb.shape == (batch, n_class_seen)
    assert jnp.allclose(emb, emb_ref, atol=5e-2, rtol=5e-2), "embedding mismatch"
    assert jnp.allclose(o, o_ref, atol=5e-2, rtol=5e-2), "log_softmax mismatch"

    print("KERNEL_OK")
</pallas_src>

<mosaic_0001>
module attributes {stable_mosaic.version = 11 : i64} {
  func.func @ood_mlp_kernel(%arg0: i32, %arg1: memref<16x128xbf16, #tpu.memory_space<vmem>>, %arg2: memref<128x128xbf16, #tpu.memory_space<vmem>>, %arg3: memref<1x128xf32, #tpu.memory_space<vmem>>, %arg4: memref<128x128xbf16, #tpu.memory_space<vmem>>, %arg5: memref<1x128xf32, #tpu.memory_space<vmem>>, %arg6: memref<16x128xf32, #tpu.memory_space<vmem>>, %arg7: memref<16x128xf32, #tpu.memory_space<vmem>>) attributes {dimension_semantics = [#tpu.dimension_semantics<parallel>], iteration_bounds = array<i64: 1>, scalar_prefetch = 0 : i64, scratch_operands = 0 : i64, tpu.core_type = #tpu.core_type<tc>, window_params = [{transform_indices = @transform_0, window_bounds = array<i64: 16, 128>}, {pipeline_mode = #tpu.pipeline_mode<synchronous>, transform_indices = @transform_1, window_bounds = array<i64: 128, 128>}, {pipeline_mode = #tpu.pipeline_mode<synchronous>, transform_indices = @transform_2, window_bounds = array<i64: 1, 128>}, {pipeline_mode = #tpu.pipeline_mode<synchronous>, transform_indices = @transform_3, window_bounds = array<i64: 128, 128>}, {pipeline_mode = #tpu.pipeline_mode<synchronous>, transform_indices = @transform_4, window_bounds = array<i64: 1, 128>}, {transform_indices = @transform_5, window_bounds = array<i64: 16, 128>}, {transform_indices = @transform_6, window_bounds = array<i64: 16, 128>}]} {
    %c0 = arith.constant 0 : index
    %c0_0 = arith.constant 0 : index
    %0 = vector.load %arg1[%c0, %c0_0] : memref<16x128xbf16, #tpu.memory_space<vmem>>, vector<16x128xbf16>
    %c0_1 = arith.constant 0 : index
    %c0_2 = arith.constant 0 : index
    %1 = vector.load %arg2[%c0_1, %c0_2] : memref<128x128xbf16, #tpu.memory_space<vmem>>, vector<128x128xbf16>
    %cst = arith.constant dense<0.000000e+00> : vector<16x128xf32>
    %2 = tpu.matmul %0, %1, %cst {dimension_numbers = #tpu.dot_dimension_numbers<[1], [0], [0], [1], [0, 0, 1, 1], [], []>} : vector<16x128xbf16>, vector<128x128xbf16>, vector<16x128xf32> -> vector<16x128xf32>
    %c0_3 = arith.constant 0 : index
    %c0_4 = arith.constant 0 : index
    %3 = vector.load %arg3[%c0_3, %c0_4] : memref<1x128xf32, #tpu.memory_space<vmem>>, vector<1x128xf32>
    %4 = vector.broadcast %3 : vector<1x128xf32> to vector<16x128xf32>
    %5 = arith.addf %2, %4 : vector<16x128xf32>
    %cst_5 = arith.constant 0.000000e+00 : f32
    %6 = vector.broadcast %cst_5 : f32 to vector<16x128xf32>
    %7 = arith.maximumf %5, %6 : vector<16x128xf32>
    %8 = arith.truncf %7 : vector<16x128xf32> to vector<16x128xbf16>
    %c0_6 = arith.constant 0 : index
    %c0_7 = arith.constant 0 : index
    %9 = vector.load %arg4[%c0_6, %c0_7] : memref<128x128xbf16, #tpu.memory_space<vmem>>, vector<128x128xbf16>
    %cst_8 = arith.constant dense<0.000000e+00> : vector<16x128xf32>
    %10 = tpu.matmul %8, %9, %cst_8 {dimension_numbers = #tpu.dot_dimension_numbers<[1], [0], [0], [1], [0, 0, 1, 1], [], []>} : vector<16x128xbf16>, vector<128x128xbf16>, vector<16x128xf32> -> vector<16x128xf32>
    %c0_9 = arith.constant 0 : index
    %c0_10 = arith.constant 0 : index
    %11 = vector.load %arg5[%c0_9, %c0_10] : memref<1x128xf32, #tpu.memory_space<vmem>>, vector<1x128xf32>
    %12 = vector.broadcast %11 : vector<1x128xf32> to vector<16x128xf32>
    %13 = arith.addf %10, %12 : vector<16x128xf32>
    %c0_11 = arith.constant 0 : index
    %c0_12 = arith.constant 0 : index
    %14 = vector.load %arg7[%c0_11, %c0_12] : memref<16x128xf32, #tpu.memory_space<vmem>>, vector<16x128xf32>
    tpu.vector_store %arg7[%c0_11, %c0_12], %13 {strides = array<i32>} : memref<16x128xf32, #tpu.memory_space<vmem>>, vector<16x128xf32>,
    %15 = tpu.iota {dimensions = array<i32: 1>} : vector<16x128xi32>
    %c16_i32 = arith.constant 16 : i32
    %16 = vector.broadcast %c16_i32 : i32 to vector<16x128xi32>
    %17 = arith.cmpi slt, %15, %16 : vector<16x128xi32>
    %cst_13 = arith.constant -3.40282347E+38 : f32
    %18 = vector.broadcast %cst_13 : f32 to vector<16x128xf32>
    %19 = arith.select %17, %13, %18 : vector<16x128xi1>, vector<16x128xf32>
    %cst_14 = arith.constant dense<0xFF800000> : vector<16xf32>
    %20 = vector.multi_reduction <maximumf>, %19, %cst_14 [1] : vector<16x128xf32> to vector<16xf32>
    %21 = vector.shape_cast %20 : vector<16xf32> to vector<16x1xf32>
    %22 = vector.broadcast %21 : vector<16x1xf32> to vector<16x128xf32>
    %23 = arith.subf %19, %22 : vector<16x128xf32>
    %24 = math.exp %23 : vector<16x128xf32>
    %cst_15 = arith.constant dense<0.000000e+00> : vector<16xf32>
    %25 = vector.multi_reduction <add>, %24, %cst_15 [1] : vector<16x128xf32> to vector<16xf32>
    %26 = vector.shape_cast %25 : vector<16xf32> to vector<16x1xf32>
    %27 = math.log %26 : vector<16x1xf32>
    %28 = vector.broadcast %27 : vector<16x1xf32> to vector<16x128xf32>
    %29 = arith.subf %23, %28 : vector<16x128xf32>
    %c0_16 = arith.constant 0 : index
    %c0_17 = arith.constant 0 : index
    %30 = vector.load %arg6[%c0_16, %c0_17] : memref<16x128xf32, #tpu.memory_space<vmem>>, vector<16x128xf32>
    tpu.vector_store %arg6[%c0_16, %c0_17], %29 {strides = array<i32>} : memref<16x128xf32, #tpu.memory_space<vmem>>, vector<16x128xf32>,
    return
  }
  func.func @transform_0(%arg0: i32) -> (i32, i32) {
    %c0_i32 = arith.constant 0 : i32
    %c0_i32_0 = arith.constant 0 : i32
    return %arg0, %c0_i32 : i32, i32
  }
  func.func @transform_1(%arg0: i32) -> (i32, i32) {
    %c0_i32 = arith.constant 0 : i32
    %c0_i32_0 = arith.constant 0 : i32
    %c0_i32_1 = arith.constant 0 : i32
    return %c0_i32, %c0_i32_0 : i32, i32
  }
  func.func @transform_2(%arg0: i32) -> (i32, i32) {
    %c0_i32 = arith.constant 0 : i32
    %c0_i32_0 = arith.constant 0 : i32
    %c0_i32_1 = arith.constant 0 : i32
    return %c0_i32, %c0_i32_0 : i32, i32
  }
  func.func @transform_3(%arg0: i32) -> (i32, i32) {
    %c0_i32 = arith.constant 0 : i32
    %c0_i32_0 = arith.constant 0 : i32
    %c0_i32_1 = arith.constant 0 : i32
    return %c0_i32, %c0_i32_0 : i32, i32
  }
  func.func @transform_4(%arg0: i32) -> (i32, i32) {
    %c0_i32 = arith.constant 0 : i32
    %c0_i32_0 = arith.constant 0 : i32
    %c0_i32_1 = arith.constant 0 : i32
    return %c0_i32, %c0_i32_0 : i32, i32
  }
  func.func @transform_5(%arg0: i32) -> (i32, i32) {
    %c0_i32 = arith.constant 0 : i32
    %c0_i32_0 = arith.constant 0 : i32
    return %arg0, %c0_i32 : i32, i32
  }
  func.func @transform_6(%arg0: i32) -> (i32, i32) {
    %c0_i32 = arith.constant 0 : i32
    %c0_i32_0 = arith.constant 0 : i32
    return %arg0, %c0_i32 : i32, i32
  }
}

</mosaic_0001>

<bundles_post_ra>
// kernel: ood_mlp_forward.1
= control target key start
LH: loop header
LB: loop body
LE: loop exit
PB: predicated region body
PF: predicated region fallthrough
CT: control target
= control target key end

     0   :  { %v399_v0 = vmov 0.0   ;;  %vm400_vm0 = vmmov 0   ;;  %v260_v28 = vlaneseq  ;;  %s505_s1 = inlined_call_operand.vmem [shape: bf16[128,128], index: 1, kind: input, shape index: {}]   ;;  %s506_s3 = inlined_call_operand.vmem [shape: bf16[128,128], index: 3, kind: input, shape index: {}]   ;;  %s507_s0 = inlined_call_operand.vmem [shape: bf16[16,128], index: 0, kind: input, shape index: {}]   ;;  %s508_s2 = inlined_call_operand.vmem [shape: f32[1,128], index: 2, kind: input, shape index: {}]   ;;  %s509_s4 = inlined_call_operand.vmem [shape: f32[1,128], index: 4, kind: input, shape index: {}]   ;;  %s510_s6 = inlined_call_operand.vmem [shape: f32[16,128], index: 6, kind: output, shape index: {1}]   ;;  %s511_s5 = inlined_call_operand.vmem [shape: f32[16,128], index: 5, kind: output, shape index: {0}]  }
   0x1   :  { %332 = vmatprep.subr.bf16.mxu0 %v399_v0  ;;  %v374_v1 = vld [vmem:[%s505_s1] sm:$0xff]   ;;  %348 = vmatprep.mubr.msk.bf16.mxu0 %vm400_vm0, %v399_v0  ;;  %v375_v2 = vld [vmem:[%s505_s1 + $0x8] sm:$0xff]   ;;  %v376_v3 = vld [vmem:[%s505_s1 + $0x10] sm:$0xff]  }
   0x2   :  { %352 = vmatprep.subr.bf16.mxu1 %v399_v0  ;;  %368 = vmatprep.mubr.msk.bf16.mxu1 %vm400_vm0, %v399_v0  ;;  %v383_v4 = vld [vmem:[%s506_s3] sm:$0xff]   ;;  %v377_v5 = vld [vmem:[%s505_s1 + $0x18] sm:$0xff]   ;;  %v384_v6 = vld [vmem:[%s506_s3 + $0x8] sm:$0xff]   ;;  %v261_v29 = vand.u32 127, %v260_v28 }
   0x3   :  { %333 = vmatpush3.bf16.msra.mxu0 %v374_v1  ;;  %353 = vmatpush3.bf16.msra.mxu1 %v383_v4  ;;  %v378_v7 = vld [vmem:[%s505_s1 + $0x20] sm:$0xff]   ;;  %v385_v8 = vld [vmem:[%s506_s3 + $0x10] sm:$0xff]   ;;  %v379_v9 = vld [vmem:[%s505_s1 + $0x28] sm:$0xff]  }
   0x4   :  { %334 = vmatprep.subr.bf16.mxu0 %v399_v0  ;;  %354 = vmatprep.subr.bf16.mxu1 %v399_v0  ;;  %v386_v10 = vld [vmem:[%s506_s3 + $0x18] sm:$0xff]   ;;  %v380_v11 = vld [vmem:[%s505_s1 + $0x30] sm:$0xff]   ;;  %v387_v12 = vld [vmem:[%s506_s3 + $0x20] sm:$0xff]   ;;  %vm262_vm1 = vcmp.lt.s32.totalorder %v261_v29, 16 }
   0x5   :  { %v381_v13 = vld [vmem:[%s505_s1 + $0x38] sm:$0xff]   ;;  %v388_v14 = vld [vmem:[%s506_s3 + $0x28] sm:$0xff]   ;;  %v382_v15 = vld [vmem:[%s507_s0] sm:$0xff]  }
   0x6   :  { %v389_v16 = vld [vmem:[%s506_s3 + $0x30] sm:$0xff]   ;;  %v390_v17 = vld [vmem:[%s506_s3 + $0x38] sm:$0xff]   ;;  %v295_v18 = vld [vmem:[%s508_s2] ss:$0 sm:$0xff] }
   0x7   :  { %335 = vmatpush3.bf16.msra.mxu0 %v375_v2  ;;  %355 = vmatpush3.bf16.msra.mxu1 %v384_v6  ;;  %v305_v30 = vld [vmem:[%s509_s4] ss:$0 sm:$0xff] }
   0x8   :  { %336 = vmatprep.subr.bf16.mxu0 %v399_v0  ;;  %356 = vmatprep.subr.bf16.mxu1 %v399_v0 }
   0xb   :  { %337 = vmatpush3.bf16.msra.mxu0 %v376_v3  ;;  %357 = vmatpush3.bf16.msra.mxu1 %v385_v8 }
   0xc   :  { %338 = vmatprep.subr.bf16.mxu0 %v399_v0  ;;  %358 = vmatprep.subr.bf16.mxu1 %v399_v0 }
   0xf   :  { %339 = vmatpush3.bf16.msra.mxu0 %v377_v5  ;;  %359 = vmatpush3.bf16.msra.mxu1 %v386_v10 }
  0x10   :  { %340 = vmatprep.subr.bf16.mxu0 %v399_v0  ;;  %360 = vmatprep.subr.bf16.mxu1 %v399_v0 }
  0x13   :  { %341 = vmatpush3.bf16.msra.mxu0 %v378_v7  ;;  %361 = vmatpush3.bf16.msra.mxu1 %v387_v12 }
  0x14   :  { %342 = vmatprep.subr.bf16.mxu0 %v399_v0  ;;  %362 = vmatprep.subr.bf16.mxu1 %v399_v0 }
  0x17   :  { %343 = vmatpush3.bf16.msra.mxu0 %v379_v9  ;;  %363 = vmatpush3.bf16.msra.mxu1 %v388_v14 }
  0x18   :  { %344 = vmatprep.subr.bf16.mxu0 %v399_v0  ;;  %364 = vmatprep.subr.bf16.mxu1 %v399_v0 }
  0x1b   :  { %345 = vmatpush3.bf16.msra.mxu0 %v380_v11  ;;  %365 = vmatpush3.bf16.msra.mxu1 %v389_v16 }
  0x1c   :  { %346 = vmatprep.subr.bf16.mxu0 %v399_v0  ;;  %366 = vmatprep.subr.bf16.mxu1 %v399_v0 }
  0x1f   :  { %347 = vmatpush3.bf16.msra.mxu0 %v381_v13  ;;  %367 = vmatpush3.bf16.msra.mxu1 %v390_v17 }
  0x22   :  { %349 = vmatmul.mubr.bf16.vlgmr.msra.gmra.mrb[0].mxu0 %v382_v15 }
  0xf5   :  { %v136_v19 = vpop.f32.mrb[0].mxu0 }
  0xf6   :  { %v137_v20 = vadd.f32 %v295_v18, %v136_v19  ;;  %v350_v21 = vpop.f32.mrb[1].mxu0 }
  0xf7   :  { %v139_v22 = vpop.f32.mrb[2].mxu0 }
  0xf8   :  { %v140_v23 = vadd.f32 %v295_v18, %v139_v22  ;;  %v351_v24 = vpop.f32.mrb[3].mxu0  ;;  %v143_v25 = vmax.f32 %v137_v20, 0.0 }
  0xfa   :  { %v144_v26 = vmax.f32 %v140_v23, 0.0 }
  0xfc   :  { %v145_v27 = vpack.c.bf16 %v144_v26, %v143_v25 }
  0xfe   :  { %369 = vmatmul.mubr.bf16.vlgmr.msra.gmra.mrb[0].mxu1 %v145_v27 }
 0x1d1   :  { %v251_v31 = vpop.f32.mrb[0].mxu1 }
 0x1d2   :  { %v252_v32 = vadd.f32 %v305_v30, %v251_v31  ;;  %v370_v33 = vpop.f32.mrb[1].mxu1 }
 0x1d3   :  { %v254_v34 = vpop.f32.mrb[2].mxu1 }
 0x1d4   :  { %258 = vst [vmem:[%s510_s6] sm:$0xff] %v252_v32  ;;  %v255_v35 = vadd.f32 %v305_v30, %v254_v34  ;;  %v371_v36 = vpop.f32.mrb[3].mxu1  ;;  %v263_v37 = vsel %vm262_vm1, %v252_v32, -3.4028235e+38 }
 0x1d5   :  { %265 = vmax.xlane.f32.xlu0 %v263_v37 }
 0x1d6   :  { %259 = vst [vmem:[%s510_s6 + $0x8] sm:$0xff] %v255_v35  ;;  %v264_v38 = vsel %vm262_vm1, %v255_v35, -3.4028235e+38 }
 0x1d9   :  { %267 = vmax.xlane.f32.xlu0 %v264_v38 }
 0x262   :  { %v266_v39 = vpop.xlane.xlu0 %265 }
 0x263   :  { %v269_v40 = vsub.f32 %v263_v37, %v266_v39 }
 0x265   :  { %v271_v41 = vmul.f32 1.442695, %v269_v40 }
 0x266   :  { %v268_v42 = vpop.xlane.xlu0 %267 }
 0x267   :  { %v270_v43 = vsub.f32 %v264_v38, %v268_v42  ;;  %391 = vpow2.f32 %v271_v41 }
 0x269   :  { %v273_v44 = vmul.f32 1.442695, %v270_v43 }
 0x26b   :  { %393 = vpow2.f32 %v273_v44 }
 0x271   :  { %v392_v45 = vpop.eup %391 }
 0x272   :  { %275 = vadd.xlane.f32.xlu1 %v392_v45 }
 0x275   :  { %v394_v46 = vpop.eup %393 }
 0x276   :  { %277 = vadd.xlane.f32.xlu1 %v394_v46 }
 0x2ff   :  { %v276_v47 = vpop.xlane.xlu1 %275 }
 0x300   :  { %395 = vlog2.f32 %v276_v47 }
 0x303   :  { %v278_v48 = vpop.xlane.xlu1 %277 }
 0x304   :  { %397 = vlog2.f32 %v278_v48 }
 0x30a   :  { %v396_v49 = vpop.eup %395 }
 0x30b   :  { %v280_v50 = vmul.f32 0.6931472, %v396_v49 }
 0x30d   :  { %v283_v51 = vsub.f32 %v269_v40, %v280_v50 }
 0x30e   :  { %v398_v52 = vpop.eup %397 }
 0x30f   :  { %285 = vst [vmem:[%s511_s5] sm:$0xff] %v283_v51  ;;  %v282_v53 = vmul.f32 0.6931472, %v398_v52 }
 0x311   :  { %v284_v54 = vsub.f32 %v270_v43, %v282_v53 }
 0x313   :  { %286 = vst [vmem:[%s511_s5 + $0x8] sm:$0xff] %v284_v54 }

</bundles_post_ra>
